<compile_context>
chip_gen: v6e
topology: v6e:2x2x1
jax: 0.10.0
libtpu: 0.0.40
codegen_flags: <defaults>
</compile_context>

<pallas_src>
import functools
import math

import jax
import jax.numpy as jnp
from jax import lax
from jax.experimental import pallas as pl
from jax.experimental.pallas import tpu as pltpu


def _sublane(dtype):
    """Minimum sublane multiple for a dtype (sub-32-bit dtypes pack along sublanes)."""
    return {4: 8, 2: 16, 1: 32}.get(jnp.dtype(dtype).itemsize, 8)


def _tile(dim, target, align):
    """Largest tile <= target that divides dim and is a multiple of `align`.
    Falls back to the full dim (always a legal block shape)."""
    if dim <= target:
        return dim
    t = (target // align) * align
    while t >= align:
        if dim % t == 0:
            return t
        t -= align
    return dim


# ----------------------------------------------------------------------------
# 1) x + positional encoding + style embedding
# ----------------------------------------------------------------------------
def add_embed_kernel(x_ref, pos_ref, style_ref, o_ref):
    o_ref[...] = (x_ref[...].astype(jnp.float32)
                  + pos_ref[...].astype(jnp.float32)[None]
                  + style_ref[...].astype(jnp.float32)[None]).astype(o_ref.dtype)


def add_embeddings(x, pos, style_vec, *, ts_target=128):
    B, S, H = x.shape
    TS = _tile(S, ts_target, _sublane(x.dtype))          # ~1-2 MiB blocks at H=4096
    return pl.pallas_call(
        add_embed_kernel,
        out_shape=jax.ShapeDtypeStruct((B, S, H), x.dtype),
        grid=(B, S // TS),
        in_specs=[
            pl.BlockSpec((1, TS, H), lambda b, s: (b, s, 0)),
            pl.BlockSpec((TS, H), lambda b, s: (s, 0)),
            pl.BlockSpec((1, H), lambda b, s: (0, 0)),
        ],
        out_specs=pl.BlockSpec((1, TS, H), lambda b, s: (b, s, 0)),
        compiler_params=pltpu.CompilerParams(
            dimension_semantics=("parallel", "parallel")),
    )(x, pos, style_vec)


# ----------------------------------------------------------------------------
# 2) fused LayerNorm + Linear (+ optional GELU):  act(LN(x) @ W + b)
#    LN(x) cached once per row tile; matmul fed in native dtype.
# ----------------------------------------------------------------------------
def ln_linear_kernel(x_ref, g_ref, b_ref, w_ref, bias_ref, o_ref, xn_sc,
                     *, eps, activation):
    @pl.when(pl.program_id(1) == 0)
    def _():
        x = x_ref[...].astype(jnp.float32)                 # stats in f32
        mu = jnp.mean(x, axis=-1, keepdims=True)
        xc = x - mu
        var = jnp.mean(xc * xc, axis=-1, keepdims=True)
        xn = xc * lax.rsqrt(var + eps)
        xn = xn * g_ref[...].astype(jnp.float32) + b_ref[...].astype(jnp.float32)
        xn_sc[...] = xn.astype(xn_sc.dtype)                # back to native dtype for the MXU

    y = jnp.dot(xn_sc[...], w_ref[...], preferred_element_type=jnp.float32)
    y = y + bias_ref[...].astype(jnp.float32)
    if activation == "gelu":
        # TODO(synk): PyTorch nn.GELU default is exact erf; tanh approximation used here.
        y = jax.nn.gelu(y, approximate=True)
    o_ref[...] = y.reshape(o_ref.shape).astype(o_ref.dtype)


def ln_linear(x2d, gamma, beta, w, bias, *, activation=None, head_dim=None,
              tm_target=256, tn_target=256):
    M, K = x2d.shape
    _, N = w.shape
    it = x2d.dtype.itemsize
    TM = _tile(M, tm_target, _sublane(x2d.dtype))
    if head_dim is None:
        TN = _tile(N, tn_target, 128)                      # lane-dense output tiles
        out_shape = jax.ShapeDtypeStruct((M, N), x2d.dtype)
        out_spec = pl.BlockSpec((TM, TN), lambda i, j: (i, j))
    else:
        # Head-major output (num_slabs, M, Dh): each column tile is one head, scattered by the
        # out index_map.  Removes the HBM-level head split/transposes before attention.
        assert head_dim % 128 == 0, "head_dim must be a multiple of 128 (lane width)"
        assert N % head_dim == 0
        TN = head_dim
        out_shape = jax.ShapeDtypeStruct((N // head_dim, M, head_dim), x2d.dtype)
        out_spec = pl.BlockSpec((1, TM, head_dim), lambda i, j: (j, i, 0))

    kernel = functools.partial(ln_linear_kernel, eps=1e-5, activation=activation)
    return pl.pallas_call(
        kernel,
        out_shape=out_shape,
        grid=(M // TM, N // TN),
        in_specs=[
            pl.BlockSpec((TM, K), lambda i, j: (i, 0)),
            pl.BlockSpec((1, K), lambda i, j: (0, 0)),
            pl.BlockSpec((1, K), lambda i, j: (0, 0)),
            pl.BlockSpec((K, TN), lambda i, j: (0, j)),
            pl.BlockSpec((1, TN), lambda i, j: (0, j)),
        ],
        out_specs=out_spec,
        scratch_shapes=[pltpu.VMEM((TM, K), x2d.dtype)],   # cached LN(x) for the row tile
        compiler_params=pltpu.CompilerParams(
            # column axis must stay "arbitrary": LN cache is filled at j==0 and reused across j.
            dimension_semantics=("parallel", "arbitrary")),
        cost_estimate=pl.CostEstimate(
            flops=2 * M * N * K + 10 * M * K,
            transcendentals=(2 * M * N if activation == "gelu" else 0) + M,
            bytes_accessed=it * (M * K                      # x, reused across column tiles
                                 + (M // TM) * K * N        # W re-streamed per row tile
                                 + (M // TM) * N + 2 * K    # bias / gamma / beta
                                 + M * N),                  # output
        ),
    )(x2d, gamma, beta, w, bias)


# ----------------------------------------------------------------------------
# 3) flash attention (online softmax) on head-major QKV, output written as (B, S, H)
# ----------------------------------------------------------------------------
def flash_kernel(q_ref, k_ref, v_ref, o_ref, q_sc, m_sc, l_sc, acc_sc,
                 *, scale, causal, tq, tkv):
    qi = pl.program_id(2)
    ki = pl.program_id(3)

    @pl.when(ki == 0)
    def _():
        # Scale q once per q tile (not per KV step) and keep it resident in native dtype.
        q_sc[...] = (q_ref[0, 0].astype(jnp.float32) * scale).astype(q_sc.dtype)
        m_sc[...] = jnp.full(m_sc.shape, -jnp.inf, jnp.float32)
        l_sc[...] = jnp.zeros(l_sc.shape, jnp.float32)
        acc_sc[...] = jnp.zeros(acc_sc.shape, jnp.float32)

    def attend():
        k = k_ref[0, 0]                                     # (TKV, Dh), native dtype
        v = v_ref[0, 0]
        # Contract last dims directly (no k.T -> no XLU transpose); native-dtype MXU feed.
        s = lax.dot_general(q_sc[...], k, (((1,), (1,)), ((), ())),
                            preferred_element_type=jnp.float32)   # (TQ, TKV)
        if causal:
            q_idx = qi * tq + lax.broadcasted_iota(jnp.int32, (tq, tkv), 0)
            k_idx = ki * tkv + lax.broadcasted_iota(jnp.int32, (tq, tkv), 1)
            keep = q_idx >= k_idx
            s = jnp.where(keep, s, -1e30)
        m_prev = m_sc[...]
        m_new = jnp.maximum(m_prev, s.max(axis=-1, keepdims=True))
        alpha = jnp.exp(m_prev - m_new)
        p = jnp.exp(s - m_new)
        l_sc[...] = alpha * l_sc[...] + p.sum(axis=-1, keepdims=True)
        acc_sc[...] = alpha * acc_sc[...] + jnp.dot(
            p.astype(v.dtype), v, preferred_element_type=jnp.float32)
        m_sc[...] = m_new

    if causal:
        # Skip fully-masked KV blocks (~halves attention work for causal).
        @pl.when(ki * tkv <= qi * tq + (tq - 1))
        def _():
            attend()
    else:
        attend()

    @pl.when(ki == pl.num_programs(3) - 1)
    def _():
        l = l_sc[...]
        inv_l = pl.reciprocal(l, approx=True)               # EUP slot
        inv_l = inv_l * (2.0 - l * inv_l)                   # one Newton step -> ~f32 accuracy
        o_ref[...] = (acc_sc[...] * inv_l)[None].astype(o_ref.dtype)


def flash_attention(qkv_heads, *, num_heads, causal=False,
                    tq_target=256, tkv_target=512):
    # qkv_heads: (3*nh, B, S, Dh) head-major buffer produced by the QKV projection.
    three_nh, B, S, Dh = qkv_heads.shape
    nh = num_heads
    assert three_nh == 3 * nh
    H = nh * Dh
    it = qkv_heads.dtype.itemsize
    sub = _sublane(qkv_heads.dtype)
    TQ = _tile(S, tq_target, sub)       # v5e: prefer ~128; v6e: can grow to 512
    TKV = _tile(S, tkv_target, sub)
    kernel = functools.partial(flash_kernel, scale=1.0 / math.sqrt(Dh),
                               causal=causal, tq=TQ, tkv=TKV)
    flops = 4 * B * S * S * H
    trans = B * nh * S * S
    if causal:
        flops //= 2
        trans //= 2
    return pl.pallas_call(
        kernel,
        out_shape=jax.ShapeDtypeStruct((B, S, H), qkv_heads.dtype),
        grid=(B, nh, S // TQ, S // TKV),
        in_specs=[
            pl.BlockSpec((1, 1, TQ, Dh), lambda b, h, qi, ki: (h, b, qi, 0)),
            pl.BlockSpec((1, 1, TKV, Dh), lambda b, h, qi, ki: (nh + h, b, ki, 0)),
            pl.BlockSpec((1, 1, TKV, Dh), lambda b, h, qi, ki: (2 * nh + h, b, ki, 0)),
        ],
        # Output written directly into (B, S, H) layout (block = this head's Dh columns).
        out_specs=pl.BlockSpec((1, TQ, Dh), lambda b, h, qi, ki: (b, qi, h)),
        scratch_shapes=[
            pltpu.VMEM((TQ, Dh), qkv_heads.dtype),   # pre-scaled q
            pltpu.VMEM((TQ, 1), jnp.float32),        # running max
            pltpu.VMEM((TQ, 1), jnp.float32),        # running denom
            pltpu.VMEM((TQ, Dh), jnp.float32),       # running weighted sum
        ],
        compiler_params=pltpu.CompilerParams(
            dimension_semantics=("parallel", "parallel", "parallel", "arbitrary")),
        cost_estimate=pl.CostEstimate(
            flops=flops,
            transcendentals=trans,
            bytes_accessed=it * (2 * B * S * H                 # q read + output write
                                 + 2 * B * S * H * (S // TQ)),  # k/v re-streamed per q tile
        ),
    )(qkv_heads, qkv_heads, qkv_heads)


# ----------------------------------------------------------------------------
# 4) residual + x @ W + b  (K-tiled reduction, f32 VMEM accumulator)
# ----------------------------------------------------------------------------
def linear_residual_kernel(x_ref, w_ref, bias_ref, res_ref, o_ref, acc_ref):
    k = pl.program_id(2)

    @pl.when(k == 0)
    def _():
        acc_ref[...] = jnp.zeros_like(acc_ref)

    acc_ref[...] += jnp.dot(x_ref[...], w_ref[...], preferred_element_type=jnp.float32)

    @pl.when(k == pl.num_programs(2) - 1)
    def _():
        y = acc_ref[...] + bias_ref[...].astype(jnp.float32) + res_ref[...].astype(jnp.float32)
        o_ref[...] = y.astype(o_ref.dtype)


def linear_residual(x2d, w, bias, residual, *, tm_target=256, tn_target=256,
                    tk_target=512):
    M, K = x2d.shape
    _, N = w.shape
    it = x2d.dtype.itemsize
    TM = _tile(M, tm_target, _sublane(x2d.dtype))
    TN = _tile(N, tn_target, 128)
    TK = _tile(K, tk_target, 128)       # bounds VMEM independent of K (FFN-2 has K = ff_dim)
    return pl.pallas_call(
        linear_residual_kernel,
        out_shape=jax.ShapeDtypeStruct((M, N), residual.dtype),
        grid=(M // TM, N // TN, K // TK),
        in_specs=[
            pl.BlockSpec((TM, TK), lambda i, j, k: (i, k)),
            pl.BlockSpec((TK, TN), lambda i, j, k: (k, j)),
            pl.BlockSpec((1, TN), lambda i, j, k: (0, j)),
            pl.BlockSpec((TM, TN), lambda i, j, k: (i, j)),
        ],
        out_specs=pl.BlockSpec((TM, TN), lambda i, j, k: (i, j)),
        scratch_shapes=[pltpu.VMEM((TM, TN), jnp.float32)],
        compiler_params=pltpu.CompilerParams(
            dimension_semantics=("parallel", "parallel", "arbitrary")),
        cost_estimate=pl.CostEstimate(
            flops=2 * M * N * K,
            transcendentals=0,
            bytes_accessed=it * ((N // TN) * M * K            # x re-streamed per column tile
                                 + (M // TM) * K * N          # W re-streamed per row tile
                                 + 2 * M * N + (M // TM) * N),
        ),
    )(x2d, w, bias, residual)


# ----------------------------------------------------------------------------
# Full Transformer forward (eval mode: dropout == identity)
# ----------------------------------------------------------------------------
def transformer_forward(x, style_id, params, *, num_heads, causal=False):
    B, S, H = x.shape
    assert H % num_heads == 0
    Dh = H // num_heads
    assert Dh % 128 == 0, "head_dim must be a multiple of 128 for the lane-sliced head layout"

    pos = params["pos_enc"][:S]                          # (S, H)
    style_vec = params["style_emb"][style_id][None, :]   # (1, H)
    x = add_embeddings(x, pos, style_vec)

    x2 = x.reshape(B * S, H)
    for layer in params["layers"]:
        # ---- attention sub-block (pre-norm, residual) ----
        qkv_heads = ln_linear(x2, layer["ln1_g"], layer["ln1_b"],
                              layer["w_qkv"], layer["b_qkv"],
                              head_dim=Dh)               # (3*nh, B*S, Dh), head-major
        qkv_heads = qkv_heads.reshape(3 * num_heads, B, S, Dh)   # free reshape
        o = flash_attention(qkv_heads, num_heads=num_heads, causal=causal)  # (B, S, H)
        x2 = linear_residual(o.reshape(B * S, H), layer["w_o"], layer["b_o"], x2)

        # ---- feed-forward sub-block (pre-norm, residual) ----
        h = ln_linear(x2, layer["ln2_g"], layer["ln2_b"],
                      layer["w1"], layer["b1"], activation="gelu")  # (B*S, F)
        x2 = linear_residual(h, layer["w2"], layer["b2"], x2)

    return x2.reshape(B, S, H)


# ----------------------------------------------------------------------------
# Pure-JAX reference (same math, high-precision matmuls)
# ----------------------------------------------------------------------------
def reference_forward(x, style_id, params, *, num_heads, causal=False):
    P = lax.Precision.HIGHEST
    B, S, H = x.shape
    Dh = H // num_heads
    x = x + params["pos_enc"][:S][None] + params["style_emb"][style_id][None, None, :]

    def ln(t, g, b, eps=1e-5):
        mu = jnp.mean(t, axis=-1, keepdims=True)
        var = jnp.mean((t - mu) ** 2, axis=-1, keepdims=True)
        return (t - mu) * lax.rsqrt(var + eps) * g + b

    for layer in params["layers"]:
        xn = ln(x, layer["ln1_g"], layer["ln1_b"])
        qkv = jnp.dot(xn, layer["w_qkv"], precision=P) + layer["b_qkv"]
        q, k, v = jnp.split(qkv, 3, axis=-1)

        def heads(t):
            return t.reshape(B, S, num_heads, Dh).transpose(0, 2, 1, 3)

        s = jnp.einsum("bhqd,bhkd->bhqk", heads(q), heads(k), precision=P) / math.sqrt(Dh)
        if causal:
            keep = jnp.tril(jnp.ones((S, S), dtype=bool))
            s = jnp.where(keep[None, None], s, -1e30)
        p = jax.nn.softmax(s, axis=-1)
        o = jnp.einsum("bhqk,bhkd->bhqd", p, heads(v), precision=P)
        o = o.transpose(0, 2, 1, 3).reshape(B, S, H)
        x = x + jnp.dot(o, layer["w_o"], precision=P) + layer["b_o"]

        xn = ln(x, layer["ln2_g"], layer["ln2_b"])
        h = jax.nn.gelu(jnp.dot(xn, layer["w1"], precision=P) + layer["b1"],
                        approximate=True)
        x = x + jnp.dot(h, layer["w2"], precision=P) + layer["b2"]
    return x


if __name__ == "__main__":
    # Small shapes, but head_dim = 128 so the lane-sliced head layout is exercised exactly as it
    # would be at production sizes (and every block stays (8,128)-legal / lane-dense).
    B, S, H = 2, 8, 256
    NUM_LAYERS, NUM_HEADS, FF_DIM = 2, 2, 1024
    MAX_POS, NUM_STYLES = 16, 3
    STYLE_ID = 1

    key = jax.random.PRNGKey(0)

    # Sinusoidal positional encoding (Vaswani et al. 2017), as in the module.
    position = jnp.arange(MAX_POS, dtype=jnp.float32)[:, None]
    div_term = jnp.exp(jnp.arange(0, H, 2, dtype=jnp.float32) * -(math.log(10000.0) / H))
    pe = jnp.zeros((MAX_POS, H), jnp.float32)
    pe = pe.at[:, 0::2].set(jnp.sin(position * div_term))
    pe = pe.at[:, 1::2].set(jnp.cos(position * div_term))

    key, k_style, k_x = jax.random.split(key, 3)
    params = {
        "pos_enc": pe,
        "style_emb": jax.random.normal(k_style, (NUM_STYLES, H), jnp.float32) * 0.02,
        "layers": [],
    }
    for _ in range(NUM_LAYERS):
        key, kq, kk, kv, ko, k1, kb1, k2, kb2 = jax.random.split(key, 9)
        wq = jax.random.normal(kq, (H, H), jnp.float32) * 0.05
        wk = jax.random.normal(kk, (H, H), jnp.float32) * 0.05
        wv = jax.random.normal(kv, (H, H), jnp.float32) * 0.05
        params["layers"].append({
            "ln1_g": jnp.ones((1, H), jnp.float32),
            "ln1_b": jnp.zeros((1, H), jnp.float32),
            "w_qkv": jnp.concatenate([wq, wk, wv], axis=1),        # (H, 3H)
            "b_qkv": jnp.zeros((1, 3 * H), jnp.float32),           # q/k/v proj: weight only
            "w_o": jax.random.normal(ko, (H, H), jnp.float32) * 0.05,
            "b_o": jnp.zeros((1, H), jnp.float32),                 # out proj: weight only
            "ln2_g": jnp.ones((1, H), jnp.float32),
            "ln2_b": jnp.zeros((1, H), jnp.float32),
            "w1": jax.random.normal(k1, (H, FF_DIM), jnp.float32) * 0.05,
            "b1": jax.random.normal(kb1, (1, FF_DIM), jnp.float32) * 0.02,
            "w2": jax.random.normal(k2, (FF_DIM, H), jnp.float32) * 0.05,
            "b2": jax.random.normal(kb2, (1, H), jnp.float32) * 0.02,
        })

    x = jax.random.normal(k_x, (B, S, H), jnp.float32)

    # Non-causal path
    out = transformer_forward(x, STYLE_ID, params, num_heads=NUM_HEADS, causal=False)
    out = jax.block_until_ready(out)
    ref = reference_forward(x, STYLE_ID, params, num_heads=NUM_HEADS, causal=False)
    assert out.shape == (B, S, H), out.shape
    max_err = float(jnp.max(jnp.abs(out - ref)))
    assert jnp.allclose(out, ref, atol=2e-3, rtol=2e-3), max_err

    # Causal path (exercises the masked-block skip)
    out_c = transformer_forward(x, STYLE_ID, params, num_heads=NUM_HEADS, causal=True)
    out_c = jax.block_until_ready(out_c)
    ref_c = reference_forward(x, STYLE_ID, params, num_heads=NUM_HEADS, causal=True)
    max_err_c = float(jnp.max(jnp.abs(out_c - ref_c)))
    assert jnp.allclose(out_c, ref_c, atol=2e-3, rtol=2e-3), max_err_c

    print("KERNEL_OK")
</pallas_src>

<mosaic_0001>
module attributes {stable_mosaic.version = 11 : i64} {
  func.func @add_embed_kernel(%arg0: i32, %arg1: i32, %arg2: memref<1x8x256xf32, #tpu.memory_space<vmem>>, %arg3: memref<8x256xf32, #tpu.memory_space<vmem>>, %arg4: memref<1x256xf32, #tpu.memory_space<vmem>>, %arg5: memref<1x8x256xf32, #tpu.memory_space<vmem>>) attributes {dimension_semantics = [#tpu.dimension_semantics<parallel>, #tpu.dimension_semantics<parallel>], iteration_bounds = array<i64: 2, 1>, scalar_prefetch = 0 : i64, scratch_operands = 0 : i64, tpu.core_type = #tpu.core_type<tc>, window_params = [{transform_indices = @transform_0, window_bounds = array<i64: 1, 8, 256>}, {transform_indices = @transform_1, window_bounds = array<i64: 8, 256>}, {pipeline_mode = #tpu.pipeline_mode<synchronous>, transform_indices = @transform_2, window_bounds = array<i64: 1, 256>}, {transform_indices = @transform_3, window_bounds = array<i64: 1, 8, 256>}]} {
    %c0 = arith.constant 0 : index
    %c0_0 = arith.constant 0 : index
    %c0_1 = arith.constant 0 : index
    %0 = vector.load %arg2[%c0, %c0_0, %c0_1] : memref<1x8x256xf32, #tpu.memory_space<vmem>>, vector<1x8x256xf32>
    %c0_2 = arith.constant 0 : index
    %c0_3 = arith.constant 0 : index
    %1 = vector.load %arg3[%c0_2, %c0_3] : memref<8x256xf32, #tpu.memory_space<vmem>>, vector<8x256xf32>
    %2 = vector.shape_cast %1 : vector<8x256xf32> to vector<1x8x256xf32>
    %3 = arith.addf %0, %2 : vector<1x8x256xf32>
    %c0_4 = arith.constant 0 : index
    %c0_5 = arith.constant 0 : index
    %4 = vector.load %arg4[%c0_4, %c0_5] : memref<1x256xf32, #tpu.memory_space<vmem>>, vector<1x256xf32>
    %5 = vector.shape_cast %4 : vector<1x256xf32> to vector<1x1x256xf32>
    %6 = vector.broadcast %5 : vector<1x1x256xf32> to vector<1x8x256xf32>
    %7 = arith.addf %3, %6 : vector<1x8x256xf32>
    %c0_6 = arith.constant 0 : index
    %c0_7 = arith.constant 0 : index
    %c0_8 = arith.constant 0 : index
    %8 = vector.load %arg5[%c0_6, %c0_7, %c0_8] : memref<1x8x256xf32, #tpu.memory_space<vmem>>, vector<1x8x256xf32>
    tpu.vector_store %arg5[%c0_6, %c0_7, %c0_8], %7 {strides = array<i32>} : memref<1x8x256xf32, #tpu.memory_space<vmem>>, vector<1x8x256xf32>,
    return
  }
  func.func @transform_0(%arg0: i32, %arg1: i32) -> (i32, i32, i32) {
    %c0_i32 = arith.constant 0 : i32
    %c0_i32_0 = arith.constant 0 : i32
    return %arg0, %arg1, %c0_i32 : i32, i32, i32
  }
  func.func @transform_1(%arg0: i32, %arg1: i32) -> (i32, i32) {
    %c0_i32 = arith.constant 0 : i32
    %c0_i32_0 = arith.constant 0 : i32
    return %arg1, %c0_i32 : i32, i32
  }
  func.func @transform_2(%arg0: i32, %arg1: i32) -> (i32, i32) {
    %c0_i32 = arith.constant 0 : i32
    %c0_i32_0 = arith.constant 0 : i32
    %c0_i32_1 = arith.constant 0 : i32
    return %c0_i32, %c0_i32_0 : i32, i32
  }
  func.func @transform_3(%arg0: i32, %arg1: i32) -> (i32, i32, i32) {
    %c0_i32 = arith.constant 0 : i32
    %c0_i32_0 = arith.constant 0 : i32
    return %arg0, %arg1, %c0_i32 : i32, i32, i32
  }
}

</mosaic_0001>

<bundles_post_ra>
// kernel: tpu_custom_call.1
= control target key start
LH: loop header
LB: loop body
LE: loop exit
PB: predicated region body
PF: predicated region fallthrough
CT: control target
= control target key end

     0   :  { %8 = vsyncpa [#allocation3], 0  ;;  %s786_s0 = inlined_call_operand.hbm [shape: f32[2,8,256], index: 0, kind: input, shape index: {}]   ;;  %s787_s1 = inlined_call_operand.hbm [shape: f32[8,256], index: 1, kind: input, shape index: {}]   ;;  %s788_s2 = inlined_call_operand.vmem [shape: f32[1,256], index: 2, kind: input, shape index: {}]   ;;  %s789_s3 = inlined_call_operand.hbm [shape: f32[2,8,256], index: 3, kind: output, shape index: {}]  }
   0x1   :  { %10 = vsyncpa [#allocation3 + $0x1], 0 }
   0x2   :  { %11 = vsyncpa [#allocation6], 0 }
   0x3   :  { %12 = vsyncpa [#allocation4], 0 }
   0x4   :  { %14 = vsyncpa [#allocation4 + $0x1], 0  ;;  %s616_s12 = smov 0   ;;  %s618_s13 = smov 0  }
   0x5   :  { %s620_s14 = smov 0   ;;  %s622_s15 = smov 0  }
   0x6   :  { %s624_s16 = smov 0   ;;  %s626_s17 = smov 0  }
   0x7 LB: > { %s361_s18 = sadd.s32 4294967295, %s591_s17   ;;  %s362_s19 = sadd.s32 4294967294, %s591_s17   ;;  %s591_s17 = sphi %s626_s17, %s20_s17   ;;  %s587_s16 = sphi %s624_s16, %s806_s16   ;;  %s583_s15 = sphi %s622_s15, %s805_s15   ;;  %s579_s14 = sphi %s620_s14, %s804_s14   ;;  %s575_s13 = sphi %s618_s13, %s803_s13   ;;  %s571_s12 = sphi %s616_s12, %s802_s12  }
   0x8   : > { %p54_p0 = scmp.ne.s32.totalorder %s575_s13, %s571_s12  ;;  %p650_p1 = scmp.eq.s32.totalorder %s361_s18, 0 }
   0x9   : > { %p654_p2 = scmp.eq.s32.totalorder %s361_s18, 1  ;;  %p133_p3 = scmp.eq.s32.totalorder %s362_s19, 1 }
   0xa   : > { %p660_p4 = por %p650_p1, %p54_p0  ;;  %p363_p5 = scmp.ge.s32.totalorder %s591_s17, 1 }
   0xb   : > { %p665_p6 = por %p133_p3, %p54_p0  ;;  %p140_p7 = scmp.lt.s32.totalorder %s591_s17, 3 }
   0xc   : > { %s793_s22 = scalar_select %p660_p4, 1, 0 }
   0xd   : > { %s794_s23 = scalar_select %p665_p6, 1, 0 }
   0xe   : > { %p670_p8 = pnand %p363_p5, %p140_p7  ;;  %s593_s25 = smov [#allocation5]  }
   0xf   : > { %s156_s26 = sshll.u32 %s593_s25, 4  ;;  %s32_s28 = sadd.s32 1, %s587_s16  ;;  %s157_s26 = int_to_ptr.vmem [resolvable:$true] %s156_s26 }
  0x10   : > { %p388_p10 = pneg %p670_p8  ;;  %s41_s29 = sadd.s32 1, %s579_s14 }
  0x11   : > { %p34_p12 = scmp.ge.s32.totalorder %s32_s28, 2  ;;  %s464_s30 = scalar_lea.vmem %s157_s26, 256 }
  0x12   : > { %p679_p11 = pnand %p388_p10, %p650_p1  ;;  %p465_p0 = scmp.ne.s32.totalorder %s157_s26, %s464_s30 }
  0x13   : > { %p472_p7 = scmp.lt.s32.totalorder %s157_s26, %s157_s26  ;;  %p473_p6 = scmp.lt.s32.totalorder %s464_s30, %s464_s30 }
  0x14   : > { %p455_p13 = pneg %p679_p11 }
  0x15   : > { %p474_p9 = por %p473_p6, %p472_p7 }
  0x16   : > { %p467_p3 = pnand %p465_p0, %p455_p13 }
  0x18   : > { %p468_p5 = pneg %p467_p3 }
  0x1a   : > { %p475_p4 = pnand %p474_p9, %p468_p5 }
  0x1c   : > { %478 = shalt.err (!%p475_p4)
}
  0x1d   : > { %391 = dma.hbm_to_vmem [thread:$0]  (!%p679_p11), %s787_s1, 256, %s157_s26, [#allocation6]  }
  0x1e   : > { %s808_s28 = smov (%p34_p12, %s32_s28), 0  ;;  %p48_p6 = scmp.ne.s32.totalorder %s579_s14, %s575_s13 }
  0x1f   : > { %p49_p4 = scmp.eq.s32.totalorder %s591_s17, 0  ;;  %s36_s6 = ssub.s32 %s587_s16, %s808_s28 }
  0x20   : > { %p401_p9 = scmp.lt.s32.totalorder %s591_s17, 2  ;;  %p39_p10 = scmp.eq.s32.totalorder %s36_s6, 0 }
  0x21   : > { %p50_p13 = por %p49_p4, %p48_p6  ;;  %p702_p0 = por %p654_p2, %p48_p6 }
  0x22   : > { %s170_s8 = sand.u32 1, %s579_s14   ;;  %s378_s11 = sshll.u32 %s587_s16, 8 }
  0x23   : > { %s708_s9 = scalar_select %p39_p10, %s579_s14, %s41_s29  }
  0x24   : > { %s366_s10 = sshll.u32 %s170_s8, 4  ;;  %s182_s25 = scalar_lea.hbm %s786_s0, %s378_s11 }
  0x25   : > { %s174_s26 = scalar_lea.vmem [#allocation2], %s366_s10  ;;  %p714_p11 = pnand %p401_p9, %p50_p13 }
  0x26   : > { %s184_s27 = sshll.u32 %s174_s26, 4  ;;  %s171_s21 = scalar_lea.sflag [#allocation3], %s170_s8  ;;  %s185_s27 = int_to_ptr.vmem [resolvable:$true] %s184_s27 }
  0x27   : > { %p481_p2 = pneg %p714_p11  ;;  %s492_s4 = scalar_lea.vmem %s185_s27, 256 }
  0x28   : > { %p493_p12 = scmp.ne.s32.totalorder %s185_s27, %s492_s4  ;;  %s594_s29 = smov [#allocation2]  }
  0x29   : > { %s497_s5 = sshll.u32 %s594_s29, 4  ;;  %s498_s5 = int_to_ptr.vmem [resolvable:$false] %s497_s5 }
  0x2a   : > { %p495_p3 = pnand %p493_p12, %p481_p2  ;;  %s499_s6 = scalar_lea.vmem %s498_s5, 512 }
  0x2b   : > { %p500_p7 = scmp.lt.s32.totalorder %s185_s27, %s498_s5  ;;  %p501_p6 = scmp.lt.s32.totalorder %s499_s6, %s492_s4 }
  0x2c   : > { %p496_p5 = pneg %p495_p3 }
  0x2d   : > { %p502_p4 = por %p501_p6, %p500_p7 }
  0x2f   : > { %p503_p10 = pnand %p502_p4, %p496_p5 }
  0x31   : > { %506 = shalt.err (!%p503_p10)
}
  0x32   : > { %395 = dma.hbm_to_vmem [thread:$0]  (!%p714_p11), %s182_s25, 256, %s185_s27, %s171_s21  }
  0x33   : > { %193 = sbr.rel (%p670_p8) target bundleno = 83 (0x53), region = 32  ;;  %s725_s8 = sand.u32 (!%p670_p8), 1, %s575_s13  }
  0x34   : > { %s370_s10 = sshll.u32 (!%p670_p8), %s725_s8, 4  ;;  %s196_s11 = scalar_lea.sflag (!%p670_p8), [#allocation3], %s725_s8 }
  0x35   : > { %s199_s18 = scalar_lea.vmem (!%p670_p8), [#allocation2], %s370_s10  ;;  %p799_p9 = scmp.ne.s32.totalorder (!%p670_p8), %s793_s22, 0 }
  0x38   : > { %558 = dma.done.wait (%p799_p9), %s196_s11, 256  }
  0x39   : > { %560 = vsyncadd (%p799_p9), %s196_s11, 4294967040 }
  0x3a   : > { %562 = dma.done.wait (%p650_p1), [#allocation6], 256  }
  0x3b   : > { %564 = vsyncadd (%p650_p1), [#allocation6], 4294967040  ;;  %v234_v0 = vlaneseq  ;;  %v226_v4 = vld [vmem:[%s199_s18] sm:$0xff]  ;;  %s225_s22 = scalar_lea.vmem [#allocation7], %s370_s10  ;;  %v227_v9 = vld [vmem:[%s199_s18 + $0x8] sm:$0xff]  ;;  %s379_s20 = sshll.u32 %s583_s15, 8 }
  0x3c   : > { %v228_v5 = vld [vmem:[#allocation5] sm:$0xff]  ;;  %s265_s25 = sshll.u32 %s225_s22, 4  ;;  %v229_v10 = vld [vmem:[#allocation5 + $0x8] sm:$0xff]  ;;  %s263_s30 = scalar_lea.hbm %s789_s3, %s379_s20  ;;  %s741_s25 = int_to_ptr.vmem [resolvable:$true] %s265_s25 }
  0x3d   : > { %v235_v1 = vshrl.u32 %v234_v0, 7  ;;  %v232_v6 = vld [vmem:[%s788_s2] sm:$0x3]  ;;  %v230_v7 = vadd.f32 %v228_v5, %v226_v4  ;;  %v231_v12 = vadd.f32 %v229_v10, %v227_v9  ;;  %s249_s21 = scalar_lea.sflag [#allocation4], %s725_s8  ;;  %s507_s4 = scalar_lea.vmem %s741_s25, 256 }
  0x3e   : > { %p508_p1 = scmp.ne.s32.totalorder %s741_s25, %s507_s4  ;;  %s595_s15 = smov [#allocation7]  }
  0x3f   : > { %v236_v2 = vsub.s32 0, %v235_v1  ;;  %v240_v3 = vsub.s32 1, %v235_v1  ;;  %s511_s29 = sshll.u32 %s595_s15, 4  ;;  %s512_s29 = int_to_ptr.vmem [resolvable:$false] %s511_s29 }
  0x40   : > { %p509_p8 = pnand %p508_p1, %p702_p0  ;;  %s513_s5 = scalar_lea.vmem %s512_s29, 512 }
  0x41   : > { %v237_v8 = vrot.slane %v232_v6, %v236_v2  ;;  %v241_v11 = vrot.slane %v232_v6, %v240_v3  ;;  %p514_p11 = scmp.lt.s32.totalorder %s741_s25, %s512_s29  ;;  %p515_p2 = scmp.lt.s32.totalorder %s513_s5, %s507_s4 }
  0x42   : > { %p510_p13 = pneg %p509_p8 }
  0x43   : > { %v244_v13 = vadd.f32 %v237_v8, %v230_v7  ;;  %v245_v14 = vadd.f32 %v241_v11, %v231_v12  ;;  %p516_p12 = por %p515_p2, %p514_p11 }
  0x45   : > { %246 = vst [vmem:[%s225_s22] sm:$0xff] %v244_v13  ;;  %247 = vst [vmem:[%s225_s22 + $0x8] sm:$0xff] %v245_v14  ;;  %p517_p3 = pnand %p516_p12, %p510_p13 }
  0x47   : > { %520 = shalt.err (!%p517_p3)
}
  0x48   : > { %s521_s6 = scalar_lea.hbm %s263_s30, 256  ;;  %s525_s11 = scalar_lea.hbm %s789_s3, 512 }
  0x49   : > { %p522_p5 = scmp.ne.s32.totalorder %s263_s30, %s521_s6  ;;  %p526_p4 = scmp.lt.s32.totalorder %s263_s30, %s789_s3 }
  0x4a   : > { %p527_p10 = scmp.lt.s32.totalorder %s525_s11, %s521_s6 }
  0x4b   : > { %p523_p7 = pnand %p522_p5, %p702_p0 }
  0x4c   : > { %p528_p9 = por %p527_p10, %p526_p4 }
  0x4d   : > { %p524_p6 = pneg %p523_p7 }
  0x4f   : > { %p529_p1 = pnand %p528_p9, %p524_p6 }
  0x51   : > { %532 = shalt.err (!%p529_p1)
}
  0x52   : > { %386 = dma.vmem_to_hbm [thread:$0]  (%p702_p0), %s741_s25, 256, %s263_s30, %s249_s21  }
  0x53 PF: > { %s277_s19 = sand.u32 1, %s571_s12   ;;  %p800_p8 = scmp.ne.s32.totalorder %s794_s23, 0 }
  0x54   : > { %p801_p13 = scmp.ge.s32.totalorder %s591_s17, 2  ;;  %s278_s22 = scalar_lea.sflag [#allocation4], %s277_s19 }
  0x56   : > { %p397_p11 = pnand %p801_p13, %p800_p8 }
  0x58   : > { %p398_p2 = pneg %p397_p11 }
  0x5a   : > { %566 = dma.done.wait (%p398_p2), %s278_s22, 256  }
  0x5b   : > { %568 = vsyncadd (%p398_p2), %s278_s22, 4294967040  ;;  %s20_s17 = sadd.s32 1, %s591_s17   ;;  %s802_s12 = smov %s575_s13 }
  0x5c   : > { %p17_p12 = scmp.ge.s32.totalorder %s20_s17, 4   ;;  %s803_s13 = smov %s579_s14 }
  0x5d   : > { %s804_s14 = smov %s708_s9  ;;  %s805_s15 = smov %s587_s16 }
  0x5e   : > { %s806_s16 = smov %s808_s28  ;;  %19 = sbr.rel (!%p17_p12) target bundleno = 7 (0x7), region = 82 }
  0x63   :  { %283 = vsyncpa [#allocation3], 1 }
  0x64   :  { %285 = vsyncpa [#allocation3 + $0x1], 1 }
  0x65   :  { %286 = vsyncpa [#allocation6], 1 }
  0x66   :  { %287 = vsyncpa [#allocation4], 1 }
  0x67   :  { %289 = vsyncpa [#allocation4 + $0x1], 1 }

</bundles_post_ra>
